<compile_context>
chip_gen: v7x
topology: tpu7x:2x2x1
jax: 0.10.0
libtpu: 0.0.40
codegen_flags: <defaults>
</compile_context>

<pallas_src>
import functools

import jax
import jax.numpy as jnp
from jax.experimental import pallas as pl
from jax.experimental.pallas import tpu as pltpu


# -----------------------------------------------------------------------------
# Fused kernel: conv1 -> bn1 -> relu -> conv2 -> bn2 -> +residual -> relu
# -----------------------------------------------------------------------------
def _basic_block_kernel(x_ref, w1_ref, b1_ref, w2_ref, b2_ref, out_ref,
                        xp_ref, patch_ref, *, H, W, pad):
    """One image per grid step.

    x_ref:     (1, Cin, H*W)        image; channels on sublanes, H*W on lanes
    w1_ref:    (C1, 9*Cin)          conv1 weight, im2col layout, BN1 scale folded
    b1_ref:    (C1, 1)              folded BN1 bias
    w2_ref:    (C2, 9*C1)           conv2 weight, BN2 scale folded
    b2_ref:    (C2, 1)              folded BN2 bias
    out_ref:   (1, C2, H*W)
    xp_ref:    (Cmax, H*W + 2*pad)  zero-haloed shift buffer (VMEM scratch)
    patch_ref: (9*Cmax, H*W)        im2col patch buffer      (VMEM scratch)
    """
    HW = H * W
    cmax = xp_ref.shape[0]

    # Zero only the halo columns (lane-aligned stores).  The interior
    # [pad : pad+HW) is fully rewritten before each conv, so the halo stays
    # zero for both conv layers and every grid step.
    xp_ref[:, 0:pad] = jnp.zeros((cmax, pad), jnp.float32)
    xp_ref[:, pad + HW:2 * pad + HW] = jnp.zeros((cmax, pad), jnp.float32)

    # Row-edge (column-wrap) masks: computed once, shared by both convs and
    # all taps; broadcast along sublanes inside jnp.where.
    col = jax.lax.broadcasted_iota(jnp.int32, (1, HW), 1) % W
    not_first_col = col > 0          # valid source for taps with dw == -1
    not_last_col = col < (W - 1)     # valid source for taps with dw == +1

    def conv3x3(v, w_ref_, b_ref_):
        """3x3 'same' conv of v:(C, HW) -> (Cout, HW) as one im2col matmul."""
        c = v.shape[0]
        # Stage v into the zero-haloed flat buffer (lane-aligned store).
        xp_ref[0:c, pad:pad + HW] = v
        t = 0
        for dh in (-1, 0, 1):            # kernel row offset (kh = dh + 1)
            for dw in (-1, 0, 1):        # kernel col offset (kw = dw + 1)
                if dh == 0 and dw == 0:
                    tap = v              # already in registers; skip reload
                else:
                    s = dh * W + dw
                    tap = xp_ref[0:c, pad + s:pad + s + HW]      # (c, HW)
                    if dw == 1:
                        tap = jnp.where(not_last_col, tap, 0.0)
                    elif dw == -1:
                        tap = jnp.where(not_first_col, tap, 0.0)
                patch_ref[t * c:(t + 1) * c, :] = tap
                t += 1
        patches = patch_ref[0:9 * c, :]                          # (9c, HW)
        return jnp.dot(w_ref_[...], patches,
                       preferred_element_type=jnp.float32) + b_ref_[...]

    x = x_ref[0].astype(jnp.float32)                             # (Cin, HW)
    h1 = jnp.maximum(conv3x3(x, w1_ref, b1_ref), 0.0)            # conv1+bn1+relu
    y = conv3x3(h1, w2_ref, b2_ref) + x                          # conv2+bn2+res
    out_ref[0] = jnp.maximum(y, 0.0).astype(out_ref.dtype)       # relu, lane-dense store


# -----------------------------------------------------------------------------
# Wrapper
# -----------------------------------------------------------------------------
def _fold_bn(gamma, beta, mean, var, eps=1e-5):
    scale = gamma * jax.lax.rsqrt(var.astype(jnp.float32) + eps)
    bias = beta - mean * scale
    return scale, bias


def _im2col_weight(w, scale):
    """(Cout, Cin, 3, 3) conv weight -> (Cout, 9*Cin) with BN scale folded.

    Row layout matches the kernel's patch rows: index = (kh*3 + kw)*Cin + cin.
    """
    cout, cin = w.shape[0], w.shape[1]
    wm = jnp.transpose(w, (0, 2, 3, 1)).reshape(cout, 9 * cin)
    return (wm * scale[:, None]).astype(jnp.float32)


def basic_block_forward(x_nchw, params, *, eps=1e-5):
    """BasicBlock forward (stride=1, downsample=None), eval-mode BatchNorm."""
    N, Cin, H, W = x_nchw.shape
    HW = H * W

    s1, b1 = _fold_bn(params["bn1_gamma"], params["bn1_beta"],
                      params["bn1_mean"], params["bn1_var"], eps)
    s2, b2 = _fold_bn(params["bn2_gamma"], params["bn2_beta"],
                      params["bn2_mean"], params["bn2_var"], eps)
    w1m = _im2col_weight(params["conv1_w"], s1)      # (C1, 9*Cin)
    w2m = _im2col_weight(params["conv2_w"], s2)      # (C2, 9*C1)
    C1, C2 = w1m.shape[0], w2m.shape[0]
    assert C2 == Cin, "identity residual requires planes == inplanes"
    b1v = b1.reshape(C1, 1).astype(jnp.float32)
    b2v = b2.reshape(C2, 1).astype(jnp.float32)

    # Lane-dense layout: (N, C, H*W) — free reshape of contiguous NCHW.
    x_flat = x_nchw.reshape(N, Cin, HW)

    cmax = max(Cin, C1)
    pad = 128 * ((W + 1 + 127) // 128)               # lane-aligned halo >= W+1

    kernel = functools.partial(_basic_block_kernel, H=H, W=W, pad=pad)
    out_flat = pl.pallas_call(
        kernel,
        out_shape=jax.ShapeDtypeStruct((N, C2, HW), x_nchw.dtype),
        grid_spec=pltpu.PrefetchScalarGridSpec(
            num_scalar_prefetch=0,
            grid=(N,),
            in_specs=[
                pl.BlockSpec((1, Cin, HW), lambda n: (n, 0, 0)),
                pl.BlockSpec((C1, 9 * Cin), lambda n: (0, 0)),
                pl.BlockSpec((C1, 1), lambda n: (0, 0)),
                pl.BlockSpec((C2, 9 * C1), lambda n: (0, 0)),
                pl.BlockSpec((C2, 1), lambda n: (0, 0)),
            ],
            out_specs=pl.BlockSpec((1, C2, HW), lambda n: (n, 0, 0)),
            scratch_shapes=[
                pltpu.VMEM((cmax, HW + 2 * pad), jnp.float32),   # shift buffer
                pltpu.VMEM((9 * cmax, HW), jnp.float32),         # im2col patches
            ],
        ),
        compiler_params=pltpu.CompilerParams(
            dimension_semantics=("parallel",)),
    )(x_flat, w1m, b1v, w2m, b2v)

    return out_flat.reshape(N, C2, H, W)


# -----------------------------------------------------------------------------
# Pure-JAX reference (mirrors the PyTorch module, eval-mode BN)
# -----------------------------------------------------------------------------
def _reference_forward(x, params, eps=1e-5):
    def conv(v, w):
        return jax.lax.conv_general_dilated(
            v, w, window_strides=(1, 1), padding=((1, 1), (1, 1)),
            dimension_numbers=("NCHW", "OIHW", "NCHW"),
            precision=jax.lax.Precision.HIGHEST)

    def bn(v, g, b, m, var):
        s = g / jnp.sqrt(var + eps)
        return v * s[None, :, None, None] + (b - m * s)[None, :, None, None]

    out = conv(x, params["conv1_w"])
    out = jax.nn.relu(bn(out, params["bn1_gamma"], params["bn1_beta"],
                         params["bn1_mean"], params["bn1_var"]))
    out = conv(out, params["conv2_w"])
    out = bn(out, params["bn2_gamma"], params["bn2_beta"],
             params["bn2_mean"], params["bn2_var"])
    return jax.nn.relu(out + x)


# -----------------------------------------------------------------------------
# Main
# -----------------------------------------------------------------------------
if __name__ == "__main__":
    # BasicBlock(inplanes=4, planes=4, cfg=4, stride=1, downsample=None)
    inplanes, cfg, planes = 4, 4, 4
    N, H, W = 2, 16, 16

    key = jax.random.PRNGKey(0)
    (k_x, k_w1, k_w2, k_g1, k_b1, k_g2, k_b2,
     k_m1, k_v1, k_m2, k_v2) = jax.random.split(key, 11)

    x = jax.random.normal(k_x, (N, inplanes, H, W), jnp.float32)

    params = {
        "conv1_w": jax.random.normal(k_w1, (cfg, inplanes, 3, 3), jnp.float32)
        * jnp.sqrt(2.0 / (9 * inplanes)),
        "conv2_w": jax.random.normal(k_w2, (planes, cfg, 3, 3), jnp.float32)
        * jnp.sqrt(2.0 / (9 * cfg)),
        "bn1_gamma": 1.0 + 0.1 * jax.random.normal(k_g1, (cfg,), jnp.float32),
        "bn1_beta": 0.1 * jax.random.normal(k_b1, (cfg,), jnp.float32),
        "bn1_mean": 0.1 * jax.random.normal(k_m1, (cfg,), jnp.float32),
        "bn1_var": jnp.abs(1.0 + 0.1 * jax.random.normal(k_v1, (cfg,), jnp.float32)),
        "bn2_gamma": 1.0 + 0.1 * jax.random.normal(k_g2, (planes,), jnp.float32),
        "bn2_beta": 0.1 * jax.random.normal(k_b2, (planes,), jnp.float32),
        "bn2_mean": 0.1 * jax.random.normal(k_m2, (planes,), jnp.float32),
        "bn2_var": jnp.abs(1.0 + 0.1 * jax.random.normal(k_v2, (planes,), jnp.float32)),
    }

    out = jax.jit(basic_block_forward)(x, params)
    out = jax.block_until_ready(out)
    assert out.shape == (N, planes, H, W), out.shape

    ref = jax.block_until_ready(jax.jit(_reference_forward)(x, params))
    assert jnp.allclose(out, ref, atol=1e-3, rtol=1e-3), float(
        jnp.max(jnp.abs(out - ref)))

    print("KERNEL_OK")
</pallas_src>

<mosaic_0001>
module attributes {stable_mosaic.version = 11 : i64} {
  func.func @_basic_block_kernel(%arg0: i32, %arg1: memref<1x4x256xf32, #tpu.memory_space<vmem>>, %arg2: memref<4x36xf32, #tpu.memory_space<vmem>>, %arg3: memref<4x1xf32, #tpu.memory_space<vmem>>, %arg4: memref<4x36xf32, #tpu.memory_space<vmem>>, %arg5: memref<4x1xf32, #tpu.memory_space<vmem>>, %arg6: memref<1x4x256xf32, #tpu.memory_space<vmem>>, %arg7: memref<4x512xf32, #tpu.memory_space<vmem>>, %arg8: memref<36x256xf32, #tpu.memory_space<vmem>>) attributes {dimension_semantics = [#tpu.dimension_semantics<parallel>], iteration_bounds = array<i64: 2>, scalar_prefetch = 0 : i64, scratch_operands = 2 : i64, tpu.core_type = #tpu.core_type<tc>, window_params = [{transform_indices = @transform_0, window_bounds = array<i64: 1, 4, 256>}, {pipeline_mode = #tpu.pipeline_mode<synchronous>, transform_indices = @transform_1, window_bounds = array<i64: 4, 36>}, {pipeline_mode = #tpu.pipeline_mode<synchronous>, transform_indices = @transform_2, window_bounds = array<i64: 4, 1>}, {pipeline_mode = #tpu.pipeline_mode<synchronous>, transform_indices = @transform_3, window_bounds = array<i64: 4, 36>}, {pipeline_mode = #tpu.pipeline_mode<synchronous>, transform_indices = @transform_4, window_bounds = array<i64: 4, 1>}, {transform_indices = @transform_5, window_bounds = array<i64: 1, 4, 256>}]} {
    %cst = arith.constant 0.000000e+00 : f32
    %0 = vector.broadcast %cst : f32 to vector<4x128xf32>
    %c0 = arith.constant 0 : index
    %c0_0 = arith.constant 0 : index
    %1 = vector.load %arg7[%c0, %c0_0] : memref<4x512xf32, #tpu.memory_space<vmem>>, vector<4x128xf32>
    tpu.vector_store %arg7[%c0, %c0_0], %0 {strides = array<i32>} : memref<4x512xf32, #tpu.memory_space<vmem>>, vector<4x128xf32>,
    %cst_1 = arith.constant 0.000000e+00 : f32
    %2 = vector.broadcast %cst_1 : f32 to vector<4x128xf32>
    %c0_2 = arith.constant 0 : index
    %c384 = arith.constant 384 : index
    %3 = vector.load %arg7[%c0_2, %c384] : memref<4x512xf32, #tpu.memory_space<vmem>>, vector<4x128xf32>
    tpu.vector_store %arg7[%c0_2, %c384], %2 {strides = array<i32>} : memref<4x512xf32, #tpu.memory_space<vmem>>, vector<4x128xf32>,
    %4 = tpu.iota {dimensions = array<i32: 1>} : vector<1x256xi32>
    %c16_i32 = arith.constant 16 : i32
    %c0_i32 = arith.constant 0 : i32
    %5 = arith.cmpi eq, %c16_i32, %c0_i32 : i32
    %c1_i32 = arith.constant 1 : i32
    %6 = arith.select %5, %c1_i32, %c16_i32 : i32
    %7 = vector.broadcast %6 : i32 to vector<1x256xi32>
    %8 = arith.remsi %4, %7 : vector<1x256xi32>
    %c0_i32_3 = arith.constant 0 : i32
    %9 = vector.broadcast %c0_i32_3 : i32 to vector<1x256xi32>
    %10 = arith.cmpi ne, %8, %9 : vector<1x256xi32>
    %c0_i32_4 = arith.constant 0 : i32
    %11 = vector.broadcast %c0_i32_4 : i32 to vector<1x256xi32>
    %12 = arith.cmpi slt, %8, %11 : vector<1x256xi32>
    %c0_i32_5 = arith.constant 0 : i32
    %13 = arith.cmpi slt, %6, %c0_i32_5 : i32
    %14 = vector.broadcast %13 : i1 to vector<1x256xi1>
    %15 = vector.broadcast %14 : vector<1x256xi1> to vector<1x256xi1>
    %16 = arith.xori %12, %15 : vector<1x256xi1>
    %17 = arith.andi %16, %10 : vector<1x256xi1>
    %18 = vector.broadcast %6 : i32 to vector<1x256xi32>
    %19 = arith.addi %8, %18 : vector<1x256xi32>
    %20 = arith.select %17, %19, %8 : vector<1x256xi1>, vector<1x256xi32>
    %c0_i32_6 = arith.constant 0 : i32
    %21 = vector.broadcast %c0_i32_6 : i32 to vector<1x256xi32>
    %22 = arith.cmpi sgt, %20, %21 : vector<1x256xi32>
    %c15_i32 = arith.constant 15 : i32
    %23 = vector.broadcast %c15_i32 : i32 to vector<1x256xi32>
    %24 = arith.cmpi slt, %20, %23 : vector<1x256xi32>
    %c0_7 = arith.constant 0 : index
    %c0_8 = arith.constant 0 : index
    %c0_9 = arith.constant 0 : index
    %25 = vector.load %arg1[%c0_7, %c0_8, %c0_9] : memref<1x4x256xf32, #tpu.memory_space<vmem>>, vector<1x4x256xf32>
    %26 = vector.shape_cast %25 : vector<1x4x256xf32> to vector<4x256xf32>
    %c0_10 = arith.constant 0 : index
    %c128 = arith.constant 128 : index
    %27 = vector.load %arg7[%c0_10, %c128] : memref<4x512xf32, #tpu.memory_space<vmem>>, vector<4x256xf32>
    tpu.vector_store %arg7[%c0_10, %c128], %26 {strides = array<i32>} : memref<4x512xf32, #tpu.memory_space<vmem>>, vector<4x256xf32>,
    %c0_11 = arith.constant 0 : index
    %c111 = arith.constant 111 : index
    %28 = vector.load %arg7[%c0_11, %c111] : memref<4x512xf32, #tpu.memory_space<vmem>>, vector<4x256xf32>
    %cst_12 = arith.constant 0.000000e+00 : f32
    %29 = vector.shape_cast %22 : vector<1x256xi1> to vector<1x256xi1>
    %30 = vector.broadcast %29 : vector<1x256xi1> to vector<4x256xi1>
    %31 = vector.broadcast %cst_12 : f32 to vector<4x256xf32>
    %32 = arith.select %30, %28, %31 : vector<4x256xi1>, vector<4x256xf32>
    %c0_13 = arith.constant 0 : index
    %c0_14 = arith.constant 0 : index
    %33 = vector.load %arg8[%c0_13, %c0_14] : memref<36x256xf32, #tpu.memory_space<vmem>>, vector<4x256xf32>
    tpu.vector_store %arg8[%c0_13, %c0_14], %32 {strides = array<i32>} : memref<36x256xf32, #tpu.memory_space<vmem>>, vector<4x256xf32>,
    %c0_15 = arith.constant 0 : index
    %c112 = arith.constant 112 : index
    %34 = vector.load %arg7[%c0_15, %c112] : memref<4x512xf32, #tpu.memory_space<vmem>>, vector<4x256xf32>
    %c4 = arith.constant 4 : index
    %c0_16 = arith.constant 0 : index
    %35 = vector.load %arg8[%c4, %c0_16] : memref<36x256xf32, #tpu.memory_space<vmem>>, vector<4x256xf32>
    tpu.vector_store %arg8[%c4, %c0_16], %34 {strides = array<i32>} : memref<36x256xf32, #tpu.memory_space<vmem>>, vector<4x256xf32>,
    %c0_17 = arith.constant 0 : index
    %c113 = arith.constant 113 : index
    %36 = vector.load %arg7[%c0_17, %c113] : memref<4x512xf32, #tpu.memory_space<vmem>>, vector<4x256xf32>
    %cst_18 = arith.constant 0.000000e+00 : f32
    %37 = vector.shape_cast %24 : vector<1x256xi1> to vector<1x256xi1>
    %38 = vector.broadcast %37 : vector<1x256xi1> to vector<4x256xi1>
    %39 = vector.broadcast %cst_18 : f32 to vector<4x256xf32>
    %40 = arith.select %38, %36, %39 : vector<4x256xi1>, vector<4x256xf32>
    %c8 = arith.constant 8 : index
    %c0_19 = arith.constant 0 : index
    %41 = vector.load %arg8[%c8, %c0_19] : memref<36x256xf32, #tpu.memory_space<vmem>>, vector<4x256xf32>
    tpu.vector_store %arg8[%c8, %c0_19], %40 {strides = array<i32>} : memref<36x256xf32, #tpu.memory_space<vmem>>, vector<4x256xf32>,
    %c0_20 = arith.constant 0 : index
    %c127 = arith.constant 127 : index
    %42 = vector.load %arg7[%c0_20, %c127] : memref<4x512xf32, #tpu.memory_space<vmem>>, vector<4x256xf32>
    %cst_21 = arith.constant 0.000000e+00 : f32
    %43 = vector.shape_cast %22 : vector<1x256xi1> to vector<1x256xi1>
    %44 = vector.broadcast %43 : vector<1x256xi1> to vector<4x256xi1>
    %45 = vector.broadcast %cst_21 : f32 to vector<4x256xf32>
    %46 = arith.select %44, %42, %45 : vector<4x256xi1>, vector<4x256xf32>
    %c12 = arith.constant 12 : index
    %c0_22 = arith.constant 0 : index
    %47 = vector.load %arg8[%c12, %c0_22] : memref<36x256xf32, #tpu.memory_space<vmem>>, vector<4x256xf32>
    tpu.vector_store %arg8[%c12, %c0_22], %46 {strides = array<i32>} : memref<36x256xf32, #tpu.memory_space<vmem>>, vector<4x256xf32>,
    %c16 = arith.constant 16 : index
    %c0_23 = arith.constant 0 : index
    %48 = vector.load %arg8[%c16, %c0_23] : memref<36x256xf32, #tpu.memory_space<vmem>>, vector<4x256xf32>
    tpu.vector_store %arg8[%c16, %c0_23], %26 {strides = array<i32>} : memref<36x256xf32, #tpu.memory_space<vmem>>, vector<4x256xf32>,
    %c0_24 = arith.constant 0 : index
    %c129 = arith.constant 129 : index
    %49 = vector.load %arg7[%c0_24, %c129] : memref<4x512xf32, #tpu.memory_space<vmem>>, vector<4x256xf32>
    %cst_25 = arith.constant 0.000000e+00 : f32
    %50 = vector.shape_cast %24 : vector<1x256xi1> to vector<1x256xi1>
    %51 = vector.broadcast %50 : vector<1x256xi1> to vector<4x256xi1>
    %52 = vector.broadcast %cst_25 : f32 to vector<4x256xf32>
    %53 = arith.select %51, %49, %52 : vector<4x256xi1>, vector<4x256xf32>
    %c20 = arith.constant 20 : index
    %c0_26 = arith.constant 0 : index
    %54 = vector.load %arg8[%c20, %c0_26] : memref<36x256xf32, #tpu.memory_space<vmem>>, vector<4x256xf32>
    tpu.vector_store %arg8[%c20, %c0_26], %53 {strides = array<i32>} : memref<36x256xf32, #tpu.memory_space<vmem>>, vector<4x256xf32>,
    %c0_27 = arith.constant 0 : index
    %c143 = arith.constant 143 : index
    %55 = vector.load %arg7[%c0_27, %c143] : memref<4x512xf32, #tpu.memory_space<vmem>>, vector<4x256xf32>
    %cst_28 = arith.constant 0.000000e+00 : f32
    %56 = vector.shape_cast %22 : vector<1x256xi1> to vector<1x256xi1>
    %57 = vector.broadcast %56 : vector<1x256xi1> to vector<4x256xi1>
    %58 = vector.broadcast %cst_28 : f32 to vector<4x256xf32>
    %59 = arith.select %57, %55, %58 : vector<4x256xi1>, vector<4x256xf32>
    %c24 = arith.constant 24 : index
    %c0_29 = arith.constant 0 : index
    %60 = vector.load %arg8[%c24, %c0_29] : memref<36x256xf32, #tpu.memory_space<vmem>>, vector<4x256xf32>
    tpu.vector_store %arg8[%c24, %c0_29], %59 {strides = array<i32>} : memref<36x256xf32, #tpu.memory_space<vmem>>, vector<4x256xf32>,
    %c0_30 = arith.constant 0 : index
    %c144 = arith.constant 144 : index
    %61 = vector.load %arg7[%c0_30, %c144] : memref<4x512xf32, #tpu.memory_space<vmem>>, vector<4x256xf32>
    %c28 = arith.constant 28 : index
    %c0_31 = arith.constant 0 : index
    %62 = vector.load %arg8[%c28, %c0_31] : memref<36x256xf32, #tpu.memory_space<vmem>>, vector<4x256xf32>
    tpu.vector_store %arg8[%c28, %c0_31], %61 {strides = array<i32>} : memref<36x256xf32, #tpu.memory_space<vmem>>, vector<4x256xf32>,
    %c0_32 = arith.constant 0 : index
    %c145 = arith.constant 145 : index
    %63 = vector.load %arg7[%c0_32, %c145] : memref<4x512xf32, #tpu.memory_space<vmem>>, vector<4x256xf32>
    %cst_33 = arith.constant 0.000000e+00 : f32
    %64 = vector.shape_cast %24 : vector<1x256xi1> to vector<1x256xi1>
    %65 = vector.broadcast %64 : vector<1x256xi1> to vector<4x256xi1>
    %66 = vector.broadcast %cst_33 : f32 to vector<4x256xf32>
    %67 = arith.select %65, %63, %66 : vector<4x256xi1>, vector<4x256xf32>
    %c32 = arith.constant 32 : index
    %c0_34 = arith.constant 0 : index
    %68 = vector.load %arg8[%c32, %c0_34] : memref<36x256xf32, #tpu.memory_space<vmem>>, vector<4x256xf32>
    tpu.vector_store %arg8[%c32, %c0_34], %67 {strides = array<i32>} : memref<36x256xf32, #tpu.memory_space<vmem>>, vector<4x256xf32>,
    %c0_35 = arith.constant 0 : index
    %c0_36 = arith.constant 0 : index
    %69 = vector.load %arg8[%c0_35, %c0_36] : memref<36x256xf32, #tpu.memory_space<vmem>>, vector<36x256xf32>
    %c0_37 = arith.constant 0 : index
    %c0_38 = arith.constant 0 : index
    %70 = vector.load %arg2[%c0_37, %c0_38] : memref<4x36xf32, #tpu.memory_space<vmem>>, vector<4x36xf32>
    %cst_39 = arith.constant dense<0.000000e+00> : vector<4x256xf32>
    %71 = tpu.matmul %70, %69, %cst_39 {dimension_numbers = #tpu.dot_dimension_numbers<[1], [0], [0], [1], [0, 0, 1, 1], [], []>} : vector<4x36xf32>, vector<36x256xf32>, vector<4x256xf32> -> vector<4x256xf32>
    %c0_40 = arith.constant 0 : index
    %c0_41 = arith.constant 0 : index
    %72 = vector.load %arg3[%c0_40, %c0_41] : memref<4x1xf32, #tpu.memory_space<vmem>>, vector<4x1xf32>
    %73 = vector.broadcast %72 : vector<4x1xf32> to vector<4x256xf32>
    %74 = arith.addf %71, %73 : vector<4x256xf32>
    %cst_42 = arith.constant 0.000000e+00 : f32
    %75 = vector.broadcast %cst_42 : f32 to vector<4x256xf32>
    %76 = arith.maximumf %74, %75 : vector<4x256xf32>
    %c0_43 = arith.constant 0 : index
    %c128_44 = arith.constant 128 : index
    %77 = vector.load %arg7[%c0_43, %c128_44] : memref<4x512xf32, #tpu.memory_space<vmem>>, vector<4x256xf32>
    tpu.vector_store %arg7[%c0_43, %c128_44], %76 {strides = array<i32>} : memref<4x512xf32, #tpu.memory_space<vmem>>, vector<4x256xf32>,
    %c0_45 = arith.constant 0 : index
    %c111_46 = arith.constant 111 : index
    %78 = vector.load %arg7[%c0_45, %c111_46] : memref<4x512xf32, #tpu.memory_space<vmem>>, vector<4x256xf32>
    %cst_47 = arith.constant 0.000000e+00 : f32
    %79 = vector.shape_cast %22 : vector<1x256xi1> to vector<1x256xi1>
    %80 = vector.broadcast %79 : vector<1x256xi1> to vector<4x256xi1>
    %81 = vector.broadcast %cst_47 : f32 to vector<4x256xf32>
    %82 = arith.select %80, %78, %81 : vector<4x256xi1>, vector<4x256xf32>
    %c0_48 = arith.constant 0 : index
    %c0_49 = arith.constant 0 : index
    %83 = vector.load %arg8[%c0_48, %c0_49] : memref<36x256xf32, #tpu.memory_space<vmem>>, vector<4x256xf32>
    tpu.vector_store %arg8[%c0_48, %c0_49], %82 {strides = array<i32>} : memref<36x256xf32, #tpu.memory_space<vmem>>, vector<4x256xf32>,
    %c0_50 = arith.constant 0 : index
    %c112_51 = arith.constant 112 : index
    %84 = vector.load %arg7[%c0_50, %c112_51] : memref<4x512xf32, #tpu.memory_space<vmem>>, vector<4x256xf32>
    %c4_52 = arith.constant 4 : index
    %c0_53 = arith.constant 0 : index
    %85 = vector.load %arg8[%c4_52, %c0_53] : memref<36x256xf32, #tpu.memory_space<vmem>>, vector<4x256xf32>
    tpu.vector_store %arg8[%c4_52, %c0_53], %84 {strides = array<i32>} : memref<36x256xf32, #tpu.memory_space<vmem>>, vector<4x256xf32>,
    %c0_54 = arith.constant 0 : index
    %c113_55 = arith.constant 113 : index
    %86 = vector.load %arg7[%c0_54, %c113_55] : memref<4x512xf32, #tpu.memory_space<vmem>>, vector<4x256xf32>
    %cst_56 = arith.constant 0.000000e+00 : f32
    %87 = vector.shape_cast %24 : vector<1x256xi1> to vector<1x256xi1>
    %88 = vector.broadcast %87 : vector<1x256xi1> to vector<4x256xi1>
    %89 = vector.broadcast %cst_56 : f32 to vector<4x256xf32>
    %90 = arith.select %88, %86, %89 : vector<4x256xi1>, vector<4x256xf32>
    %c8_57 = arith.constant 8 : index
    %c0_58 = arith.constant 0 : index
    %91 = vector.load %arg8[%c8_57, %c0_58] : memref<36x256xf32, #tpu.memory_space<vmem>>, vector<4x256xf32>
    tpu.vector_store %arg8[%c8_57, %c0_58], %90 {strides = array<i32>} : memref<36x256xf32, #tpu.memory_space<vmem>>, vector<4x256xf32>,
    %c0_59 = arith.constant 0 : index
    %c127_60 = arith.constant 127 : index
    %92 = vector.load %arg7[%c0_59, %c127_60] : memref<4x512xf32, #tpu.memory_space<vmem>>, vector<4x256xf32>
    %cst_61 = arith.constant 0.000000e+00 : f32
    %93 = vector.shape_cast %22 : vector<1x256xi1> to vector<1x256xi1>
    %94 = vector.broadcast %93 : vector<1x256xi1> to vector<4x256xi1>
    %95 = vector.broadcast %cst_61 : f32 to vector<4x256xf32>
    %96 = arith.select %94, %92, %95 : vector<4x256xi1>, vector<4x256xf32>
    %c12_62 = arith.constant 12 : index
    %c0_63 = arith.constant 0 : index
    %97 = vector.load %arg8[%c12_62, %c0_63] : memref<36x256xf32, #tpu.memory_space<vmem>>, vector<4x256xf32>
    tpu.vector_store %arg8[%c12_62, %c0_63], %96 {strides = array<i32>} : memref<36x256xf32, #tpu.memory_space<vmem>>, vector<4x256xf32>,
    %c16_64 = arith.constant 16 : index
    %c0_65 = arith.constant 0 : index
    %98 = vector.load %arg8[%c16_64, %c0_65] : memref<36x256xf32, #tpu.memory_space<vmem>>, vector<4x256xf32>
    tpu.vector_store %arg8[%c16_64, %c0_65], %76 {strides = array<i32>} : memref<36x256xf32, #tpu.memory_space<vmem>>, vector<4x256xf32>,
    %c0_66 = arith.constant 0 : index
    %c129_67 = arith.constant 129 : index
    %99 = vector.load %arg7[%c0_66, %c129_67] : memref<4x512xf32, #tpu.memory_space<vmem>>, vector<4x256xf32>
    %cst_68 = arith.constant 0.000000e+00 : f32
    %100 = vector.shape_cast %24 : vector<1x256xi1> to vector<1x256xi1>
    %101 = vector.broadcast %100 : vector<1x256xi1> to vector<4x256xi1>
    %102 = vector.broadcast %cst_68 : f32 to vector<4x256xf32>
    %103 = arith.select %101, %99, %102 : vector<4x256xi1>, vector<4x256xf32>
    %c20_69 = arith.constant 20 : index
    %c0_70 = arith.constant 0 : index
    %104 = vector.load %arg8[%c20_69, %c0_70] : memref<36x256xf32, #tpu.memory_space<vmem>>, vector<4x256xf32>
    tpu.vector_store %arg8[%c20_69, %c0_70], %103 {strides = array<i32>} : memref<36x256xf32, #tpu.memory_space<vmem>>, vector<4x256xf32>,
    %c0_71 = arith.constant 0 : index
    %c143_72 = arith.constant 143 : index
    %105 = vector.load %arg7[%c0_71, %c143_72] : memref<4x512xf32, #tpu.memory_space<vmem>>, vector<4x256xf32>
    %cst_73 = arith.constant 0.000000e+00 : f32
    %106 = vector.shape_cast %22 : vector<1x256xi1> to vector<1x256xi1>
    %107 = vector.broadcast %106 : vector<1x256xi1> to vector<4x256xi1>
    %108 = vector.broadcast %cst_73 : f32 to vector<4x256xf32>
    %109 = arith.select %107, %105, %108 : vector<4x256xi1>, vector<4x256xf32>
    %c24_74 = arith.constant 24 : index
    %c0_75 = arith.constant 0 : index
    %110 = vector.load %arg8[%c24_74, %c0_75] : memref<36x256xf32, #tpu.memory_space<vmem>>, vector<4x256xf32>
    tpu.vector_store %arg8[%c24_74, %c0_75], %109 {strides = array<i32>} : memref<36x256xf32, #tpu.memory_space<vmem>>, vector<4x256xf32>,
    %c0_76 = arith.constant 0 : index
    %c144_77 = arith.constant 144 : index
    %111 = vector.load %arg7[%c0_76, %c144_77] : memref<4x512xf32, #tpu.memory_space<vmem>>, vector<4x256xf32>
    %c28_78 = arith.constant 28 : index
    %c0_79 = arith.constant 0 : index
    %112 = vector.load %arg8[%c28_78, %c0_79] : memref<36x256xf32, #tpu.memory_space<vmem>>, vector<4x256xf32>
    tpu.vector_store %arg8[%c28_78, %c0_79], %111 {strides = array<i32>} : memref<36x256xf32, #tpu.memory_space<vmem>>, vector<4x256xf32>,
    %c0_80 = arith.constant 0 : index
    %c145_81 = arith.constant 145 : index
    %113 = vector.load %arg7[%c0_80, %c145_81] : memref<4x512xf32, #tpu.memory_space<vmem>>, vector<4x256xf32>
    %cst_82 = arith.constant 0.000000e+00 : f32
    %114 = vector.shape_cast %24 : vector<1x256xi1> to vector<1x256xi1>
    %115 = vector.broadcast %114 : vector<1x256xi1> to vector<4x256xi1>
    %116 = vector.broadcast %cst_82 : f32 to vector<4x256xf32>
    %117 = arith.select %115, %113, %116 : vector<4x256xi1>, vector<4x256xf32>
    %c32_83 = arith.constant 32 : index
    %c0_84 = arith.constant 0 : index
    %118 = vector.load %arg8[%c32_83, %c0_84] : memref<36x256xf32, #tpu.memory_space<vmem>>, vector<4x256xf32>
    tpu.vector_store %arg8[%c32_83, %c0_84], %117 {strides = array<i32>} : memref<36x256xf32, #tpu.memory_space<vmem>>, vector<4x256xf32>,
    %c0_85 = arith.constant 0 : index
    %c0_86 = arith.constant 0 : index
    %119 = vector.load %arg8[%c0_85, %c0_86] : memref<36x256xf32, #tpu.memory_space<vmem>>, vector<36x256xf32>
    %c0_87 = arith.constant 0 : index
    %c0_88 = arith.constant 0 : index
    %120 = vector.load %arg4[%c0_87, %c0_88] : memref<4x36xf32, #tpu.memory_space<vmem>>, vector<4x36xf32>
    %cst_89 = arith.constant dense<0.000000e+00> : vector<4x256xf32>
    %121 = tpu.matmul %120, %119, %cst_89 {dimension_numbers = #tpu.dot_dimension_numbers<[1], [0], [0], [1], [0, 0, 1, 1], [], []>} : vector<4x36xf32>, vector<36x256xf32>, vector<4x256xf32> -> vector<4x256xf32>
    %c0_90 = arith.constant 0 : index
    %c0_91 = arith.constant 0 : index
    %122 = vector.load %arg5[%c0_90, %c0_91] : memref<4x1xf32, #tpu.memory_space<vmem>>, vector<4x1xf32>
    %123 = vector.broadcast %122 : vector<4x1xf32> to vector<4x256xf32>
    %124 = arith.addf %121, %123 : vector<4x256xf32>
    %125 = arith.addf %124, %26 : vector<4x256xf32>
    %cst_92 = arith.constant 0.000000e+00 : f32
    %126 = vector.broadcast %cst_92 : f32 to vector<4x256xf32>
    %127 = arith.maximumf %125, %126 : vector<4x256xf32>
    %c0_93 = arith.constant 0 : index
    %c0_94 = arith.constant 0 : index
    %c0_95 = arith.constant 0 : index
    %128 = vector.load %arg6[%c0_93, %c0_94, %c0_95] : memref<1x4x256xf32, #tpu.memory_space<vmem>>, vector<1x4x256xf32>
    %129 = vector.shape_cast %128 : vector<1x4x256xf32> to vector<4x256xf32>
    %130 = vector.shape_cast %127 : vector<4x256xf32> to vector<1x4x256xf32>
    tpu.vector_store %arg6[%c0_93, %c0_94, %c0_95], %130 {strides = array<i32>} : memref<1x4x256xf32, #tpu.memory_space<vmem>>, vector<1x4x256xf32>,
    return
  }
  func.func @transform_0(%arg0: i32) -> (i32, i32, i32) {
    %c0_i32 = arith.constant 0 : i32
    %c0_i32_0 = arith.constant 0 : i32
    %c0_i32_1 = arith.constant 0 : i32
    return %arg0, %c0_i32, %c0_i32_0 : i32, i32, i32
  }
  func.func @transform_1(%arg0: i32) -> (i32, i32) {
    %c0_i32 = arith.constant 0 : i32
    %c0_i32_0 = arith.constant 0 : i32
    %c0_i32_1 = arith.constant 0 : i32
    return %c0_i32, %c0_i32_0 : i32, i32
  }
  func.func @transform_2(%arg0: i32) -> (i32, i32) {
    %c0_i32 = arith.constant 0 : i32
    %c0_i32_0 = arith.constant 0 : i32
    %c0_i32_1 = arith.constant 0 : i32
    return %c0_i32, %c0_i32_0 : i32, i32
  }
  func.func @transform_3(%arg0: i32) -> (i32, i32) {
    %c0_i32 = arith.constant 0 : i32
    %c0_i32_0 = arith.constant 0 : i32
    %c0_i32_1 = arith.constant 0 : i32
    return %c0_i32, %c0_i32_0 : i32, i32
  }
  func.func @transform_4(%arg0: i32) -> (i32, i32) {
    %c0_i32 = arith.constant 0 : i32
    %c0_i32_0 = arith.constant 0 : i32
    %c0_i32_1 = arith.constant 0 : i32
    return %c0_i32, %c0_i32_0 : i32, i32
  }
  func.func @transform_5(%arg0: i32) -> (i32, i32, i32) {
    %c0_i32 = arith.constant 0 : i32
    %c0_i32_0 = arith.constant 0 : i32
    %c0_i32_1 = arith.constant 0 : i32
    return %arg0, %c0_i32, %c0_i32_0 : i32, i32, i32
  }
}

</mosaic_0001>

<bundles_post_ra>
// kernel: basic_block_forward.1
= control target key start
LH: loop header
LB: loop body
LE: loop exit
PB: predicated region body
PF: predicated region fallthrough
CT: control target
= control target key end

     0   :  { %s988_s18 = smov 0   ;;  %s1194_s0 = inlined_call_operand.vmem [shape: f32[2,4,256], index: 0, kind: input, shape index: {}]   ;;  %s1195_s1 = inlined_call_operand.vmem [shape: f32[4,36], index: 1, kind: input, shape index: {}]   ;;  %s1196_s2 = inlined_call_operand.vmem [shape: f32[4,1], index: 2, kind: input, shape index: {}]   ;;  %s1197_s3 = inlined_call_operand.vmem [shape: f32[4,36], index: 3, kind: input, shape index: {}]   ;;  %s1198_s4 = inlined_call_operand.vmem [shape: f32[4,1], index: 4, kind: input, shape index: {}]   ;;  %s1199_s5 = inlined_call_operand.vmem [shape: f32[2,4,256], index: 5, kind: output, shape index: {}]  }
   0x1 LB: > { %s874_s19 = sadd.s32 4294967295, %s946_s18   ;;  %p878_p0 = scmp.ge.s32.totalorder %s946_s18, 1  ;;  %s946_s18 = sphi %s988_s18, %s15_s18  }
   0x2   : > { %p187_p1 = scmp.lt.s32.totalorder %s946_s18, 3 }
   0x4   : > { %p188_p2 = pnand %p878_p0, %p187_p1 }
   0x5   : > { %p215_p3 = scmp.lt.s32.totalorder (!%p188_p2), %s874_s19, 1  ;;  %v948_v0 = vmov (!%p188_p2), 0.0   ;;  %s949_s24 = smov (!%p188_p2), 1   ;;  %v957_v15 = vmov (!%p188_p2), 0   ;;  %v454_v16 = vld [vmem:[%s1196_s2] sm:$0xf] (!%p188_p2)  ;;  %v227_v17 = vlaneseq (!%p188_p2) }
   0x6   : > { %191 = sbr.rel (%p188_p2) target bundleno = 811 (0x32b), region = 40  ;;  %225 = vst [vmem:[#allocation2] sm:$0xf] (!%p188_p2), %v948_v0  ;;  %226 = vst [vmem:[#allocation2 + $0xc] sm:$0xf] (!%p188_p2), %v948_v0  ;;  %535 = vmatprep.mubr.f32.mxu0 (!%p188_p2), %v948_v0  ;;  %803 = vmatprep.mubr.f32.mxu1 (!%p188_p2), %v948_v0  ;;  %s950_s25 = smov (!%p188_p2), 17  }
   0x7   : > { %s951_s26 = smov (!%p188_p2), 15   ;;  %s952_s27 = smov (!%p188_p2), 16   ;;  %927 = vset.pattern.permute.xlu0 (!%p188_p2), %v957_v15  ;;  %v228_v18 = vand.u32 (!%p188_p2), 127, %v227_v17  ;;  %vm275_vm0 = vcmask (!%p188_p2), 138240   ;;  %vm318_vm3 = vcmask (!%p188_p2), 121856   ;;  %vm338_vm5 = vcmask (!%p188_p2), 7168  }
   0x8   : > { %s953_s28 = smov (!%p188_p2), 127   ;;  %s954_s29 = smov (!%p188_p2), 113   ;;  %vm296_vm6 = vcmask (!%p188_p2), 130048   ;;  %vm369_vm8 = vcmask (!%p188_p2), 1039360   ;;  %vm395_vm9 = vcmask (!%p188_p2), 924672   ;;  %vm416_vm10 = vcmask (!%p188_p2), 916480  }
   0x9   : > { %s955_s30 = smov (!%p188_p2), 112   ;;  %s956_s6 = smov (!%p188_p2), 111   ;;  %v229_v19 = vadd.s32 (!%p188_p2), 128, %v228_v18  ;;  %v234_v22 = vand.u32 (!%p188_p2), 15, %v228_v18  ;;  %vm434_vm11 = vcmask (!%p188_p2), 908288   ;;  %vm464_vm12 = vcmask (!%p188_p2), 1043456  }
   0xa   : > { %vm460_vm13 = vcmask (!%p188_p2), 293888  }
   0xb   : > { %v241_v23 = vand.u32 (!%p188_p2), 15, %v229_v19  ;;  %vm1049_vm1 = vcmp.gt.s32.totalorder (!%p188_p2), %v234_v22, 0  ;;  %vm1077_vm7 = vcmp.lt.s32.totalorder (!%p188_p2), %v234_v22, 15 }
   0xd   : > { %s1209_s19 = smov (!%p215_p3, %s874_s19), 1  ;;  %v359_v10 = vld [vmem:[#allocation2 + $0xc] sm:$0xf]  ;;  %vm1053_vm2 = vcmp.gt.s32.totalorder %v241_v23, 0  ;;  %vm1063_vm4 = vcmp.lt.s32.totalorder %v241_v23, 15 }
   0xe   : > { %s891_s20 = sshll.u32 %s1209_s19, 3  ;;  %v385_v11 = vld [vmem:[#allocation2 + $0xc] sm:$0xf] }
   0xf   : > { %s219_s23 = scalar_lea.vmem %s1194_s0, %s891_s20  ;;  %v932_v12 = vld [vmem:[#allocation2 + $0xc] ss:$0 sps:$4 sm:$0xff]   ;;  %s224_s17 = scalar_lea.vmem %s1199_s5, %s891_s20 }
  0x10   : > { %v1004_v1 = vld [vmem:[%s219_s23] sm:$0xff]  ;;  %v424_v14 = vld [vmem:[#allocation2 + $0xc] sm:$0xf] }
  0x11   : > { %259 = vst [vmem:[#allocation2 + $0x4] sm:$0xff] %v1004_v1  ;;  %356 = vst [vmem:[#allocation3 + $0x20] sm:$0xf] %v1004_v1  ;;  %v1010_v2 = vcombine.high %v1004_v1, %v1004_v1  ;;  %v408_v13 = vcombine.low %v1004_v1, %v1004_v1 }
  0x13   : > { %357 = vst [vmem:[#allocation3 + $0x28] sm:$0xf] %v1010_v2 }
  0x18   : > { %v328_v3 = vld [vmem:[#allocation2 + $0x8] sm:$0xf]  ;;  %v327_v4 = vld [vmem:[#allocation2] sm:$0xff] }
  0x19   : > { %336 = vrot.lane.b32.xlu0 %v328_v3, %s949_s24  ;;  %332 = vrot.lane.b32.xlu1 %v327_v4, %s949_s24  ;;  %v261_v5 = vld [vmem:[#allocation2 + $0x8] sm:$0xf]  ;;  %v268_v6 = vcombine.high %v327_v4, %v327_v4  ;;  %v288_v9 = vcombine.low %v327_v4, %v327_v4 }
  0x1a   : > { %v304_v7 = vld [vmem:[#allocation2 + $0x8] sm:$0xf] }
  0x1b   : > { %v929_v8 = vld [vmem:[#allocation2 + $0x8] ss:$0 sps:$4 sm:$0xff]  }
  0x1d   : > { %273 = vrot.lane.b32.xlu0 %v261_v5, %s950_s25  ;;  %269 = vrot.lane.b32.xlu1 %v327_v4, %s950_s25 }
  0x21   : > { %316 = vrot.lane.b32.xlu0 %v304_v7, %s951_s26  ;;  %271 = vrot.lane.b32.xlu1 %v268_v6, %s950_s25 }
  0x25   : > { %292 = vrot.lane.b32.xlu0 %v327_v4, %s952_s27  ;;  %314 = vrot.lane.b32.xlu1 %v268_v6, %s951_s26 }
  0x29   : > { %334 = vrot.lane.b32.xlu0 %v268_v6, %s949_s24  ;;  %294 = vrot.lane.b32.xlu1 %v929_v8, %s952_s27 }
  0x2d   : > { %312 = vrot.lane.b32.xlu0 %v327_v4, %s951_s26  ;;  %290 = vrot.lane.b32.xlu1 %v288_v9, %s952_s27 }
  0x31   : > { %365 = vrot.lane.b32.xlu0 %v1010_v2, %s953_s28  ;;  %367 = vrot.lane.b32.xlu1 %v359_v10, %s953_s28 }
  0x35   : > { %363 = vrot.lane.b32.xlu0 %v1004_v1, %s953_s28  ;;  %391 = vrot.lane.b32.xlu1 %v1010_v2, %s954_s29 }
  0x39   : > { %393 = vrot.lane.b32.xlu0 %v385_v11, %s954_s29  ;;  %389 = vrot.lane.b32.xlu1 %v1004_v1, %s954_s29 }
  0x3d   : > { %412 = vrot.lane.b32.xlu0 %v1004_v1, %s955_s30  ;;  %414 = vrot.lane.b32.xlu1 %v932_v12, %s955_s30 }
  0x41   : > { %410 = vrot.lane.b32.xlu0 %v408_v13, %s955_s30  ;;  %430 = vrot.lane.b32.xlu1 %v1010_v2, %s956_s6 }
  0x45   : > { %432 = vrot.lane.b32.xlu0 %v424_v14, %s956_s6  ;;  %428 = vrot.lane.b32.xlu1 %v1004_v1, %s956_s6 }
  0x49   : > { %457 = vperm.xlu0 %927, %v454_v16  }
  0x8b   : > { %v337_v20 = vpop.permute.xlu0 %336  ;;  %v333_v21 = vpop.permute.xlu1 %332 }
  0x8f   : > { %v274_v24 = vpop.permute.xlu0 %273  ;;  %v270_v25 = vpop.permute.xlu1 %269 }
  0x93   : > { %v317_v28 = vpop.permute.xlu0 %316  ;;  %v272_v29 = vpop.permute.xlu1 %271 }
  0x94   : > { %v276_v30 = vsel %vm275_vm0, %v270_v25, %v272_v29  ;;  %v277_v31 = vsel %vm275_vm0, %v272_v29, %v274_v24 }
  0x95   : > { %v280_v32 = vsel %vm1049_vm1, %v276_v30, 0.0  ;;  %v281_v33 = vsel %vm1053_vm2, %v277_v31, 0.0 }
  0x96   : > { %282 = vst [vmem:[#allocation3] sm:$0xf] %v280_v32  ;;  %283 = vst [vmem:[#allocation3 + $0x8] sm:$0xf] %v281_v33 }
  0x97   : > { %v293_v35 = vpop.permute.xlu0 %292  ;;  %v315_v36 = vpop.permute.xlu1 %314 }
  0x98   : > { %v320_v37 = vsel %vm318_vm3, %v315_v36, %v317_v28 }
  0x99   : > { %v324_v38 = vsel %vm1063_vm4, %v320_v37, 0.0 }
  0x9a   : > { %326 = vst [vmem:[#allocation3 + $0x18] sm:$0xf] %v324_v38  ;;  %v633_v38 = vld [vmem:[#allocation2 + $0xc] sm:$0xf] }
  0x9b   : > { %v335_v39 = vpop.permute.xlu0 %334  ;;  %v295_v40 = vpop.permute.xlu1 %294  ;;  %641 = vrot.lane.b32.xlu1 %v633_v38, %s953_s28 }
  0x9c   : > { %v339_v41 = vsel %vm338_vm5, %v333_v21, %v335_v39  ;;  %v340_v42 = vsel %vm338_vm5, %v335_v39, %v337_v20  ;;  %v298_v43 = vsel %vm296_vm6, %v293_v35, %v295_v40  ;;  %v658_v39 = vld [vmem:[#allocation2 + $0xc] sm:$0xf] }
  0x9d   : > { %v343_v44 = vsel %vm1049_vm1, %v339_v41, 0.0  ;;  %v344_v45 = vsel %vm1053_vm2, %v340_v42, 0.0  ;;  %302 = vst [vmem:[#allocation3 + $0x8] sm:$0xf0] %v298_v43  ;;  %v934_v40 = vld [vmem:[#allocation2 + $0xc] ss:$0 sps:$4 sm:$0xff]   ;;  %666 = vrot.lane.b32.xlu0 %v658_v39, %s954_s29 }
  0x9e   : > { %v347_v46 = vrot.slane %v343_v44, 4  ;;  %v348_v47 = vrot.slane %v344_v45, 4 }
  0x9f   : > { %v313_v49 = vpop.permute.xlu0 %312  ;;  %v291_v50 = vpop.permute.xlu1 %290  ;;  %686 = vrot.lane.b32.xlu1 %v934_v40, %s955_s30 }
  0xa0   : > { %351 = vst [vmem:[#allocation3 + $0x10] sm:$0xf0] %v347_v46  ;;  %352 = vst [vmem:[#allocation3 + $0x18] sm:$0xf0] %v348_v47  ;;  %v319_v51 = vsel %vm318_vm3, %v313_v49, %v315_v36  ;;  %v297_v52 = vsel %vm296_vm6, %v291_v50, %v293_v35  ;;  %v453_v35 = vld [vmem:[%s1195_s1] sm:$0xf] }
  0xa1   : > { %v323_v53 = vsel %vm1077_vm7, %v319_v51, 0.0  ;;  %301 = vst [vmem:[#allocation3] sm:$0xf0] %v297_v52 }
  0xa2   : > { %325 = vst [vmem:[#allocation3 + $0x10] sm:$0xf] %v323_v53 }
  0xa3   : > { %v366_v54 = vpop.permute.xlu0 %365  ;;  %v368_v55 = vpop.permute.xlu1 %367 }
  0xa4   : > { %v371_v56 = vsel %vm369_vm8, %v366_v54, %v368_v55  ;;  %v444_v61 = vld [vmem:[#allocation3 + $0x8] sm:$0xff] }
  0xa5   : > { %v375_v57 = vsel %vm1063_vm4, %v371_v56, 0.0 }
  0xa6   : > { %v379_v58 = vrot.slane %v375_v57, 4 }
  0xa7   : > { %v364_v59 = vpop.permute.xlu0 %363  ;;  %v392_v60 = vpop.permute.xlu1 %391  ;;  %v446_v62 = vld [vmem:[#allocation3 + $0x18] sm:$0xff] }
  0xa8   : > { %383 = vst [vmem:[#allocation3 + $0x28] sm:$0xf0] %v379_v58  ;;  %v370_v63 = vsel %vm369_vm8, %v364_v59, %v366_v54  ;;  %v893_v0 = vpack.c.bf16 %v446_v62, %v444_v61  ;;  %v443_v3 = vld [vmem:[#allocation3] sm:$0xff]  ;;  %v695_v59 = vld [vmem:[#allocation2 + $0xc] sm:$0xf] }
  0xa9   : > { %v374_v4 = vsel %vm1077_vm7, %v370_v63, 0.0  ;;  %v445_v5 = vld [vmem:[#allocation3 + $0x10] sm:$0xff] }
  0xaa   : > { %v378_v6 = vrot.slane %v374_v4, 4  ;;  %894 = vmatprep.subr.bf16.mxu0 %v893_v0  ;;  %v895_v7 = vpack.c.bf16 %v445_v5, %v443_v3 }
  0xab   : > { %v394_v8 = vpop.permute.xlu0 %393  ;;  %v390_v9 = vpop.permute.xlu1 %389 }
  0xac   : > { %382 = vst [vmem:[#allocation3 + $0x20] sm:$0xf0] %v378_v6  ;;  %v397_v10 = vsel %vm395_vm9, %v392_v60, %v394_v8  ;;  %v396_v11 = vsel %vm395_vm9, %v390_v9, %v392_v60  ;;  %896 = vmatpush1.bf16.msra.mxu0 %v895_v7  ;;  %v724_v60 = vld [vmem:[%s1198_s4] sm:$0xf] }
  0xad   : > { %v401_v12 = vsel %vm1053_vm2, %v397_v10, 0.0  ;;  %v400_v13 = vsel %vm1049_vm1, %v396_v11, 0.0 }
  0xae   : > { %403 = vst [vmem:[#allocation3 + $0x38] sm:$0xf] %v401_v12  ;;  %402 = vst [vmem:[#allocation3 + $0x30] sm:$0xf] %v400_v13 }
  0xaf   : > { %v413_v14 = vpop.permute.xlu0 %412  ;;  %v415_v15 = vpop.permute.xlu1 %414  ;;  %v448_v24 = vld [vmem:[#allocation3 + $0x28] sm:$0xff] }
  0xb0   : > { %v418_v16 = vsel %vm416_vm10, %v413_v14, %v415_v15 }
  0xb1   : > { %422 = vst [vmem:[#allocation3 + $0x38] sm:$0xf0] %v418_v16 }
  0xb3   : > { %v411_v17 = vpop.permute.xlu0 %410  ;;  %v431_v18 = vpop.permute.xlu1 %430  ;;  %v447_v31 = vld [vmem:[#allocation3 + $0x20] sm:$0xff] }
  0xb4   : > { %v417_v19 = vsel %vm416_vm10, %v411_v17, %v413_v14 }
  0xb5   : > { %421 = vst [vmem:[#allocation3 + $0x30] sm:$0xf0] %v417_v19 }
  0xb7   : > { %v433_v20 = vpop.permute.xlu0 %432  ;;  %v429_v21 = vpop.permute.xlu1 %428 }
  0xb8   : > { %v436_v22 = vsel %vm434_vm11, %v431_v18, %v433_v20  ;;  %v435_v23 = vsel %vm434_vm11, %v429_v21, %v431_v18  ;;  %v450_v25 = vld [vmem:[#allocation3 + $0x38] sm:$0xff] }
  0xb9   : > { %v440_v28 = vsel %vm1063_vm4, %v436_v22, 0.0  ;;  %v439_v29 = vsel %vm1077_vm7, %v435_v23, 0.0  ;;  %v897_v30 = vpack.c.bf16 %v450_v25, %v448_v24 }
  0xba   : > { %442 = vst [vmem:[#allocation3 + $0x48] sm:$0xf] %v440_v28  ;;  %441 = vst [vmem:[#allocation3 + $0x40] sm:$0xf] %v439_v29 }
  0xbb   : > { %898 = vmatprep.subr.bf16.mxu0 %v897_v30 }
  0xbc   : > { %v449_v32 = vld [vmem:[#allocation3 + $0x30] sm:$0xff] }
  0xbd   : > { %v899_v33 = vpack.c.bf16 %v449_v32, %v447_v31 }
  0xbf   : > { %900 = vmatpush1.bf16.msra.mxu0 %v899_v33 }
  0xc1   : > { %v452_v36 = vld [vmem:[#allocation3 + $0x48] sm:$0xf]  ;;  %v451_v37 = vld [vmem:[#allocation3 + $0x40] sm:$0xf] }
  0xc2   : > { %883 = vmatprep.subr.msk.mxu0 %vm464_vm12, %v452_v36 }
  0xc3   : > { %884 = vmatpush1.msk.msra.mxu0 %vm464_vm12, %v451_v37 }
  0xc4   : > { %885 = vmatmul.mubr.msk.f32.vlgmr.msra.gmra.mrb[0].mxu0 %vm460_vm13, %v453_v35 }
  0xc8   : > { %v458_v41 = vpop.permute.xlu0 %457 }
 0x10d   : > { %v642_v61 = vpop.permute.xlu1 %641 }
 0x10f   : > { %v667_v62 = vpop.permute.xlu0 %666 }
 0x111   : > { %v687_v63 = vpop.permute.xlu1 %686 }
 0x197   : > { %v537_v42 = vpop.f32.mrb[0].mxu0 }
 0x198   : > { %v538_v43 = vadd.f32 %v537_v42, %v458_v41  ;;  %v539_v44 = vpop.f32.mrb[1].mxu0 }
 0x199   : > { %v540_v45 = vadd.f32 %v539_v44, %v458_v41 }
 0x19a   : > { %v542_v46 = vmax.f32 %v538_v43, 0.0 }
 0x19b   : > { %v543_v47 = vmax.f32 %v540_v45, 0.0 }
 0x19c   : > { %630 = vst [vmem:[#allocation3 + $0x20] sm:$0xf] %v542_v46  ;;  %v939_v58 = vcombine.low %v542_v46, %v542_v46 }
 0x19d   : > { %v546_v49 = vcombine.low %v542_v46, %v543_v47  ;;  %631 = vst [vmem:[#allocation3 + $0x28] sm:$0xf] %v543_v47  ;;  %v938_v56 = vcombine.low %v543_v47, %v543_v47 }
 0x19f   : > { %548 = vst [vmem:[#allocation2 + $0x4] sm:$0xff] %v546_v49 }
 0x1a6   : > { %v606_v50 = vld [vmem:[#allocation2 + $0x8] sm:$0xf]  ;;  %v605_v51 = vld [vmem:[#allocation2] sm:$0xff] }
 0x1a7   : > { %614 = vrot.lane.b32.xlu1 %v606_v50, %s949_s24  ;;  %610 = vrot.lane.b32.xlu0 %v605_v51, %s949_s24  ;;  %v550_v52 = vld [vmem:[#allocation2 + $0x8] sm:$0xf]  ;;  %v609_v54 = vcombine.high %v605_v51, %v605_v51  ;;  %v572_v57 = vcombine.low %v605_v51, %v605_v51 }
 0x1a8   : > { %v587_v53 = vld [vmem:[#allocation2 + $0x8] sm:$0xf] }
 0x1a9   : > { %v937_v55 = vld [vmem:[#allocation2 + $0x8] ss:$0 sps:$4 sm:$0xff]  }
 0x1ab   : > { %558 = vrot.lane.b32.xlu0 %v550_v52, %s950_s25  ;;  %554 = vrot.lane.b32.xlu1 %v605_v51, %s950_s25 }
 0x1af   : > { %595 = vrot.lane.b32.xlu0 %v587_v53, %s951_s26  ;;  %662 = vrot.lane.b32.xlu1 %v546_v49, %s954_s29 }
 0x1b3   : > { %576 = vrot.lane.b32.xlu0 %v605_v51, %s952_s27  ;;  %612 = vrot.lane.b32.xlu1 %v609_v54, %s949_s24 }
 0x1b7   : > { %591 = vrot.lane.b32.xlu0 %v605_v51, %s951_s26  ;;  %556 = vrot.lane.b32.xlu1 %v609_v54, %s950_s25 }
 0x1bb   : > { %637 = vrot.lane.b32.xlu0 %v546_v49, %s953_s28  ;;  %593 = vrot.lane.b32.xlu1 %v609_v54, %s951_s26 }
 0x1bf   : > { %684 = vrot.lane.b32.xlu0 %v546_v49, %s955_s30  ;;  %578 = vrot.lane.b32.xlu1 %v937_v55, %s952_s27 }
 0x1c3   : > { %639 = vrot.lane.b32.xlu0 %v938_v56, %s953_s28  ;;  %574 = vrot.lane.b32.xlu1 %v572_v57, %s952_s27 }
 0x1c7   : > { %682 = vrot.lane.b32.xlu0 %v939_v58, %s955_s30  ;;  %664 = vrot.lane.b32.xlu1 %v938_v56, %s954_s29 }
 0x1cb   : > { %703 = vrot.lane.b32.xlu0 %v695_v59, %s956_s6  ;;  %701 = vrot.lane.b32.xlu1 %v938_v56, %s956_s6 }
 0x1cf   : > { %727 = vperm.xlu0 %927, %v724_v60   ;;  %699 = vrot.lane.b32.xlu1 %v546_v49, %s956_s6 }
 0x219   : > { %v611_v0 = vpop.permute.xlu0 %610  ;;  %v615_v3 = vpop.permute.xlu1 %614 }
 0x21d   : > { %v559_v4 = vpop.permute.xlu0 %558  ;;  %v555_v5 = vpop.permute.xlu1 %554 }
 0x221   : > { %v596_v6 = vpop.permute.xlu0 %595  ;;  %v663_v7 = vpop.permute.xlu1 %662 }
 0x225   : > { %v577_v8 = vpop.permute.xlu0 %576  ;;  %v613_v9 = vpop.permute.xlu1 %612 }
 0x226   : > { %v616_v10 = vsel %vm338_vm5, %v611_v0, %v613_v9  ;;  %v617_v11 = vsel %vm338_vm5, %v613_v9, %v615_v3 }
 0x227   : > { %v620_v12 = vsel %vm1049_vm1, %v616_v10, 0.0  ;;  %v621_v13 = vsel %vm1053_vm2, %v617_v11, 0.0 }
 0x228   : > { %v624_v14 = vrot.slane %v620_v12, 4  ;;  %v625_v15 = vrot.slane %v621_v13, 4 }
 0x229   : > { %v592_v16 = vpop.permute.xlu0 %591  ;;  %v557_v17 = vpop.permute.xlu1 %556 }
 0x22a   : > { %628 = vst [vmem:[#allocation3 + $0x10] sm:$0xf0] %v624_v14  ;;  %629 = vst [vmem:[#allocation3 + $0x18] sm:$0xf0] %v625_v15  ;;  %v560_v18 = vsel %vm275_vm0, %v555_v5, %v557_v17  ;;  %v561_v19 = vsel %vm275_vm0, %v557_v17, %v559_v4 }
 0x22b   : > { %v564_v20 = vsel %vm1049_vm1, %v560_v18, 0.0  ;;  %v565_v21 = vsel %vm1053_vm2, %v561_v19, 0.0 }
 0x22c   : > { %566 = vst [vmem:[#allocation3] sm:$0xf] %v564_v20  ;;  %567 = vst [vmem:[#allocation3 + $0x8] sm:$0xf] %v565_v21 }
 0x22d   : > { %v638_v22 = vpop.permute.xlu0 %637  ;;  %v594_v23 = vpop.permute.xlu1 %593 }
 0x22e   : > { %v597_v24 = vsel %vm318_vm3, %v592_v16, %v594_v23  ;;  %v598_v25 = vsel %vm318_vm3, %v594_v23, %v596_v6 }
 0x22f   : > { %v601_v28 = vsel %vm1077_vm7, %v597_v24, 0.0  ;;  %v602_v29 = vsel %vm1063_vm4, %v598_v25, 0.0 }
 0x230   : > { %603 = vst [vmem:[#allocation3 + $0x10] sm:$0xf] %v601_v28  ;;  %604 = vst [vmem:[#allocation3 + $0x18] sm:$0xf] %v602_v29 }
 0x231   : > { %v685_v30 = vpop.permute.xlu0 %684  ;;  %v579_v31 = vpop.permute.xlu1 %578 }
 0x232   : > { %v689_v32 = vsel %vm416_vm10, %v685_v30, %v687_v63  ;;  %v581_v33 = vsel %vm296_vm6, %v577_v8, %v579_v31 }
 0x233   : > { %693 = vst [vmem:[#allocation3 + $0x38] sm:$0xf0] %v689_v32  ;;  %585 = vst [vmem:[#allocation3 + $0x8] sm:$0xf0] %v581_v33 }
 0x235   : > { %v640_v35 = vpop.permute.xlu0 %639  ;;  %v575_v36 = vpop.permute.xlu1 %574 }
 0x236   : > { %v643_v37 = vsel %vm369_vm8, %v638_v22, %v640_v35  ;;  %v644_v38 = vsel %vm369_vm8, %v640_v35, %v642_v61  ;;  %v580_v39 = vsel %vm296_vm6, %v575_v36, %v577_v8 }
 0x237   : > { %v647_v40 = vsel %vm1077_vm7, %v643_v37, 0.0  ;;  %v648_v41 = vsel %vm1063_vm4, %v644_v38, 0.0  ;;  %584 = vst [vmem:[#allocation3] sm:$0xf0] %v580_v39  ;;  %v716_v51 = vld [vmem:[#allocation3 + $0x18] sm:$0xff]  ;;  %v715_v59 = vld [vmem:[#allocation3 + $0x10] sm:$0xff] }
 0x238   : > { %v651_v42 = vrot.slane %v647_v40, 4  ;;  %v652_v43 = vrot.slane %v648_v41, 4 }
 0x239   : > { %v683_v44 = vpop.permute.xlu0 %682  ;;  %v665_v45 = vpop.permute.xlu1 %664 }
 0x23a   : > { %655 = vst [vmem:[#allocation3 + $0x20] sm:$0xf0] %v651_v42  ;;  %656 = vst [vmem:[#allocation3 + $0x28] sm:$0xf0] %v652_v43  ;;  %v688_v46 = vsel %vm416_vm10, %v683_v44, %v685_v30  ;;  %v668_v47 = vsel %vm395_vm9, %v663_v7, %v665_v45  ;;  %v669_v49 = vsel %vm395_vm9, %v665_v45, %v667_v62  ;;  %v714_v50 = vld [vmem:[#allocation3 + $0x8] sm:$0xff] }
 0x23b   : > { %692 = vst [vmem:[#allocation3 + $0x30] sm:$0xf0] %v688_v46  ;;  %v672_v52 = vsel %vm1049_vm1, %v668_v47, 0.0  ;;  %v673_v53 = vsel %vm1053_vm2, %v669_v49, 0.0  ;;  %v901_v54 = vpack.c.bf16 %v716_v51, %v714_v50  ;;  %v723_v7 = vld [vmem:[%s1197_s3] sm:$0xf] }
 0x23c   : > { %674 = vst [vmem:[#allocation3 + $0x30] sm:$0xf] %v672_v52  ;;  %675 = vst [vmem:[#allocation3 + $0x38] sm:$0xf] %v673_v53 }
 0x23d   : > { %v704_v55 = vpop.permute.xlu0 %703  ;;  %902 = vmatprep.subr.bf16.mxu1 %v901_v54  ;;  %v702_v56 = vpop.permute.xlu1 %701 }
 0x23e   : > { %v706_v57 = vsel %vm434_vm11, %v702_v56, %v704_v55  ;;  %v713_v58 = vld [vmem:[#allocation3] sm:$0xff] }
 0x23f   : > { %v710_v60 = vsel %vm1063_vm4, %v706_v57, 0.0  ;;  %v903_v61 = vpack.c.bf16 %v715_v59, %v713_v58 }
 0x240   : > { %712 = vst [vmem:[#allocation3 + $0x48] sm:$0xf] %v710_v60 }
 0x241   : > { %904 = vmatpush1.bf16.msra.mxu1 %v903_v61  ;;  %v700_v26 = vpop.permute.xlu1 %699  ;;  %v718_v62 = vld [vmem:[#allocation3 + $0x28] sm:$0xff]  ;;  %v717_v3 = vld [vmem:[#allocation3 + $0x20] sm:$0xff] }
 0x242   : > { %v705_v27 = vsel %vm434_vm11, %v700_v26, %v702_v56 }
 0x243   : > { %v709_v63 = vsel %vm1077_vm7, %v705_v27, 0.0  ;;  %v720_v0 = vld [vmem:[#allocation3 + $0x38] sm:$0xff]  ;;  %v719_v4 = vld [vmem:[#allocation3 + $0x30] sm:$0xff] }
 0x244   : > { %711 = vst [vmem:[#allocation3 + $0x40] sm:$0xf] %v709_v63  ;;  %v905_v5 = vpack.c.bf16 %v720_v0, %v718_v62  ;;  %v907_v6 = vpack.c.bf16 %v719_v4, %v717_v3 }
 0x246   : > { %906 = vmatprep.subr.bf16.mxu1 %v905_v5 }
 0x247   : > { %908 = vmatpush1.bf16.msra.mxu1 %v907_v6  ;;  %v722_v34 = vld [vmem:[#allocation3 + $0x48] sm:$0xf] }
 0x248   : > { %886 = vmatprep.subr.msk.mxu1 %vm464_vm12, %v722_v34 }
 0x24b   : > { %v721_v8 = vld [vmem:[#allocation3 + $0x40] sm:$0xf] }
 0x24c   : > { %887 = vmatpush1.msk.msra.mxu1 %vm464_vm12, %v721_v8 }
 0x24d   : > { %888 = vmatmul.mubr.msk.f32.vlgmr.msra.gmra.mrb[0].mxu1 %vm460_vm13, %v723_v7 }
 0x24e   : > { %v728_v48 = vpop.permute.xlu0 %727 }
 0x320   : > { %v805_v9 = vpop.f32.mrb[0].mxu1 }
 0x321   : > { %v806_v10 = vadd.f32 %v805_v9, %v728_v48  ;;  %v807_v11 = vpop.f32.mrb[1].mxu1 }
 0x322   : > { %v808_v12 = vadd.f32 %v807_v11, %v728_v48 }
 0x323   : > { %v810_v13 = vadd.f32 %v806_v10, %v1004_v1 }
 0x324   : > { %v811_v14 = vadd.f32 %v808_v12, %v1010_v2 }
 0x325   : > { %v812_v15 = vmax.f32 %v810_v13, 0.0 }
 0x326   : > { %v813_v16 = vmax.f32 %v811_v14, 0.0 }
 0x328   : > { %v816_v17 = vcombine.low %v812_v15, %v813_v16 }
 0x32a   : > { %818 = vst [vmem:[%s224_s17] sm:$0xff] %v816_v17 }
 0x32b PF: > { %s15_s18 = sadd.s32 1, %s946_s18  }
 0x32c   : > { %p12_p4 = scmp.ge.s32.totalorder %s15_s18, 4  }
 0x32e   :  { %14 = sbr.rel (!%p12_p4) target bundleno = 1 (0x1), region = 70 }

</bundles_post_ra>
